<compile_context>
chip_gen: v7x
topology: tpu7x:2x2x1
jax: 0.10.0
libtpu: 0.0.40
codegen_flags: <defaults>
</compile_context>

<pallas_src>
import functools
import math

import jax
import jax.numpy as jnp
from jax.experimental import pallas as pl
from jax.experimental.pallas import tpu as pltpu


def _round_up(x, m):
    return (x + m - 1) // m * m


def _largest_dividing_tile(total, max_tile, quantum=128):
    """Largest multiple of `quantum` <= max_tile that divides `total`.

    `total` must be a multiple of `quantum` (so `quantum` always works)."""
    cand = min(max_tile, total)
    cand = (cand // quantum) * quantum
    while cand > quantum and total % cand:
        cand -= quantum
    return max(cand, quantum)


def _gemm_bias_kernel(p_ref, w_ref, b_ref, o_ref, acc_ref, *, tk, weight_resident):
    # grid = (j over N tiles, i over M tiles, k over K tiles) -- k innermost
    # p_ref: (tm, tk) bf16 im2col patches
    # w_ref: (Kp, tn) bf16 (weight-resident) or (tk, tn) bf16 (tiled)
    # b_ref: (1,  tn) f32  bias
    # o_ref: (tm, tn) f32  output tile
    # acc_ref: (tm, tn) f32 VMEM accumulator (persists across the K grid axis)
    k = pl.program_id(2)

    @pl.when(k == 0)
    def _init():
        # fold bias into the accumulator (once per (i, j) tile, not per K step)
        acc_ref[...] = jnp.broadcast_to(b_ref[...], acc_ref.shape)

    if weight_resident:
        # whole (Kp, tn) weight column is resident in VMEM; slice current K tile
        w = w_ref[pl.ds(pl.multiple_of(k * tk, tk), tk), :]
    else:
        w = w_ref[...]

    acc_ref[...] += jnp.dot(p_ref[...], w, preferred_element_type=jnp.float32)

    @pl.when(k == pl.num_programs(2) - 1)
    def _finalize():
        o_ref[...] = acc_ref[...].astype(o_ref.dtype)


def downsample_forward(x, weight, bias):
    """Conv2d(C, C, 3, stride=2, padding=1) forward.

    x:      (B, C, H, W)    float32, NCHW (PyTorch layout)
    weight: (Cout, Cin, 3, 3)
    bias:   (Cout,)
    returns (B, Cout, H_out, W_out) float32, H_out = floor((H-1)/2)+1
    """
    B, C, H, W = x.shape
    Cout, Cin, KH, KW = weight.shape
    assert Cin == C and KH == 3 and KW == 3
    stride = 2
    Ho = (H + 2 - 3) // stride + 1
    Wo = (W + 2 - 3) // stride + 1

    # ---- glue: cast to bf16 FIRST (halves intermediate HBM traffic), then
    #      pad + im2col (patch order kh, kw, cin) ----
    xb = x.astype(jnp.bfloat16)
    xp = jnp.pad(xb, ((0, 0), (0, 0), (1, 1), (1, 1)))        # (B, C, H+2, W+2)
    xp = jnp.transpose(xp, (0, 2, 3, 1))                       # (B, H+2, W+2, C)
    taps = [
        xp[:, kh:kh + stride * Ho:stride, kw:kw + stride * Wo:stride, :]
        for kh in range(3) for kw in range(3)
    ]                                                          # 9 x (B, Ho, Wo, C)
    pat = jnp.concatenate(taps, axis=-1).reshape(B * Ho * Wo, 9 * C)

    # weights: (Cout, Cin, 3, 3) -> (3, 3, Cin, Cout) -> (9*Cin, Cout), bf16
    w_flat = jnp.transpose(weight.astype(jnp.bfloat16), (2, 3, 1, 0)).reshape(9 * C, Cout)

    M, K = B * Ho * Wo, 9 * C
    N = Cout

    # ---- tile selection (exact-dividing K tiles, lane-dense N, bf16-friendly M) ----
    Kp = _round_up(K, 128)
    Np = _round_up(N, 128)
    tk = _largest_dividing_tile(Kp, 1024)                      # divides Kp exactly
    tn = Np if Np <= 1024 else _largest_dividing_tile(Np, 512)  # divides Np exactly
    tm = 512 if M >= 512 else _round_up(M, 16)                 # mult of 16 for bf16
    Mp = _round_up(M, tm)

    # Hold the whole flattened weight column resident in VMEM when it fits a
    # conservative double-buffered budget (safe on v5e/v6e/v7x); else tile it.
    weight_resident = (2 * Kp * tn * 2) <= (12 << 20)
    weight_block_rows = Kp if weight_resident else tk

    # ---- pad at the kernel boundary (operands already bf16, f32 accumulate) ----
    pat_p = jnp.pad(pat, ((0, Mp - M), (0, Kp - K)))
    w_p = jnp.pad(w_flat, ((0, Kp - K), (0, Np - N)))
    b_p = jnp.pad(bias.astype(jnp.float32).reshape(1, N), ((0, 0), (0, Np - N)))

    grid = (Np // tn, Mp // tm, Kp // tk)                      # (j, i, k), K innermost

    if weight_resident:
        w_spec = pl.BlockSpec((Kp, tn), lambda j, i, k: (0, j))
    else:
        w_spec = pl.BlockSpec((tk, tn), lambda j, i, k: (k, j))

    # ---- VMEM budget -> explicit vmem_limit_bytes (fits all generations) ----
    vmem_need = (
        2 * tm * tk * 2                      # patch tiles (bf16, double-buffered)
        + 2 * weight_block_rows * tn * 2     # weight blocks (bf16, double-buffered)
        + 2 * 8 * tn * 4                     # bias (sublane-padded)
        + 2 * tm * tn * 4                    # output tiles (f32, double-buffered)
        + tm * tn * 4                        # accumulator scratch
    )
    vmem_limit = min(max(int(vmem_need * 1.3) + (2 << 20), 16 << 20), 48 << 20)

    n_weight_fetch = 1 if weight_resident else (Mp // tm)
    cost = pl.CostEstimate(
        flops=2 * Mp * Kp * Np,
        transcendentals=0,
        bytes_accessed=(Np // tn) * Mp * Kp * 2
        + n_weight_fetch * Kp * Np * 2
        + Np * 4
        + Mp * Np * 4,
    )

    kernel = functools.partial(
        _gemm_bias_kernel, tk=tk, weight_resident=weight_resident
    )

    out = pl.pallas_call(
        kernel,
        out_shape=jax.ShapeDtypeStruct((Mp, Np), jnp.float32),
        grid_spec=pltpu.PrefetchScalarGridSpec(
            num_scalar_prefetch=0,
            grid=grid,
            in_specs=[
                pl.BlockSpec((tm, tk), lambda j, i, k: (i, k)),   # patches
                w_spec,                                            # weights
                pl.BlockSpec((1, tn), lambda j, i, k: (0, j)),     # bias
            ],
            out_specs=pl.BlockSpec((tm, tn), lambda j, i, k: (i, j)),
            scratch_shapes=[pltpu.VMEM((tm, tn), jnp.float32)],
        ),
        compiler_params=pltpu.CompilerParams(
            dimension_semantics=("parallel", "parallel", "arbitrary"),
            vmem_limit_bytes=vmem_limit,
        ),
        cost_estimate=cost,
    )(pat_p, w_p, b_p)

    # drop padding, back to NCHW (PyTorch module contract)
    # TODO(synk): return NHWC (and/or bf16) directly if downstream blocks allow it.
    out = out[:M, :N].reshape(B, Ho, Wo, Cout)
    return jnp.transpose(out, (0, 3, 1, 2))


if __name__ == "__main__":
    key = jax.random.PRNGKey(0)
    B, C, H, W = 2, 4, 16, 16

    kx, kw, kb = jax.random.split(key, 3)
    x = jax.random.normal(kx, (B, C, H, W), dtype=jnp.float32)

    # Deterministic param init mimicking nn.Conv2d default (uniform +-1/sqrt(fan_in))
    fan_in = C * 3 * 3
    bound = 1.0 / math.sqrt(fan_in)
    weight = jax.random.uniform(kw, (C, C, 3, 3), jnp.float32, -bound, bound)
    bias = jax.random.uniform(kb, (C,), jnp.float32, -bound, bound)

    fwd = jax.jit(downsample_forward)
    y = fwd(x, weight, bias)
    jax.block_until_ready(y)

    # Reference conv (XLA, f32) for correctness check (bf16 operands -> loose tol)
    y_ref = jax.lax.conv_general_dilated(
        x, weight,
        window_strides=(2, 2),
        padding=((1, 1), (1, 1)),
        dimension_numbers=("NCHW", "OIHW", "NCHW"),
    ) + bias.reshape(1, C, 1, 1)

    assert y.shape == (B, C, H // 2, W // 2), y.shape
    err = float(jnp.max(jnp.abs(y - y_ref)))
    assert jnp.allclose(y, y_ref, atol=5e-2, rtol=5e-2), err

    print("KERNEL_OK")
</pallas_src>

<mosaic_0001>
module attributes {stable_mosaic.version = 11 : i64} {
  func.func @_gemm_bias_kernel(%arg0: i32, %arg1: i32, %arg2: i32, %arg3: memref<128x128xbf16, #tpu.memory_space<vmem>>, %arg4: memref<128x128xbf16, #tpu.memory_space<vmem>>, %arg5: memref<1x128xf32, #tpu.memory_space<vmem>>, %arg6: memref<128x128xf32, #tpu.memory_space<vmem>>, %arg7: memref<128x128xf32, #tpu.memory_space<vmem>>) attributes {dimension_semantics = [#tpu.dimension_semantics<parallel>, #tpu.dimension_semantics<parallel>, #tpu.dimension_semantics<arbitrary>], iteration_bounds = array<i64: 1, 1, 1>, scalar_prefetch = 0 : i64, scratch_operands = 1 : i64, tpu.core_type = #tpu.core_type<tc>, window_params = [{transform_indices = @transform_0, window_bounds = array<i64: 128, 128>}, {transform_indices = @transform_1, window_bounds = array<i64: 128, 128>}, {transform_indices = @transform_2, window_bounds = array<i64: 1, 128>}, {transform_indices = @transform_3, window_bounds = array<i64: 128, 128>}]} {
    %c0_i32 = arith.constant 0 : i32
    %0 = arith.cmpi eq, %arg2, %c0_i32 : i32
    %1 = arith.extui %0 : i1 to i32
    %c0_i32_0 = arith.constant 0 : i32
    %2 = arith.cmpi ne, %1, %c0_i32_0 : i32
    scf.if %2 {
      %c0_9 = arith.constant 0 : index
      %c0_10 = arith.constant 0 : index
      %15 = vector.load %arg5[%c0_9, %c0_10] : memref<1x128xf32, #tpu.memory_space<vmem>>, vector<1x128xf32>
      %16 = vector.shape_cast %15 : vector<1x128xf32> to vector<1x128xf32>
      %17 = vector.broadcast %16 : vector<1x128xf32> to vector<128x128xf32>
      %c0_11 = arith.constant 0 : index
      %c0_12 = arith.constant 0 : index
      %18 = vector.load %arg7[%c0_11, %c0_12] : memref<128x128xf32, #tpu.memory_space<vmem>>, vector<128x128xf32>
      tpu.vector_store %arg7[%c0_11, %c0_12], %17 {strides = array<i32>} : memref<128x128xf32, #tpu.memory_space<vmem>>, vector<128x128xf32>,
    } else {
    }
    %c128_i32 = arith.constant 128 : i32
    %3 = arith.muli %arg2, %c128_i32 : i32
    %4 = tpu.assume_multiple %3, 128 : i32
    %5 = arith.index_cast %4 : i32 to index
    %c0 = arith.constant 0 : index
    %6 = vector.load %arg4[%5, %c0] : memref<128x128xbf16, #tpu.memory_space<vmem>>, vector<128x128xbf16>
    %c0_1 = arith.constant 0 : index
    %c0_2 = arith.constant 0 : index
    %7 = vector.load %arg7[%c0_1, %c0_2] : memref<128x128xf32, #tpu.memory_space<vmem>>, vector<128x128xf32>
    %c0_3 = arith.constant 0 : index
    %c0_4 = arith.constant 0 : index
    %8 = vector.load %arg3[%c0_3, %c0_4] : memref<128x128xbf16, #tpu.memory_space<vmem>>, vector<128x128xbf16>
    %cst = arith.constant dense<0.000000e+00> : vector<128x128xf32>
    %9 = tpu.matmul %8, %6, %cst {dimension_numbers = #tpu.dot_dimension_numbers<[1], [0], [0], [1], [0, 0, 1, 1], [], []>} : vector<128x128xbf16>, vector<128x128xbf16>, vector<128x128xf32> -> vector<128x128xf32>
    %10 = arith.addf %7, %9 : vector<128x128xf32>
    %c0_5 = arith.constant 0 : index
    %c0_6 = arith.constant 0 : index
    %11 = vector.load %arg7[%c0_5, %c0_6] : memref<128x128xf32, #tpu.memory_space<vmem>>, vector<128x128xf32>
    tpu.vector_store %arg7[%c0_5, %c0_6], %10 {strides = array<i32>} : memref<128x128xf32, #tpu.memory_space<vmem>>, vector<128x128xf32>,
    %c0_i32_7 = arith.constant 0 : i32
    %12 = arith.cmpi eq, %arg2, %c0_i32_7 : i32
    %13 = arith.extui %12 : i1 to i32
    %c0_i32_8 = arith.constant 0 : i32
    %14 = arith.cmpi ne, %13, %c0_i32_8 : i32
    scf.if %14 {
      %c0_9 = arith.constant 0 : index
      %c0_10 = arith.constant 0 : index
      %15 = vector.load %arg7[%c0_9, %c0_10] : memref<128x128xf32, #tpu.memory_space<vmem>>, vector<128x128xf32>
      %c0_11 = arith.constant 0 : index
      %c0_12 = arith.constant 0 : index
      %16 = vector.load %arg6[%c0_11, %c0_12] : memref<128x128xf32, #tpu.memory_space<vmem>>, vector<128x128xf32>
      tpu.vector_store %arg6[%c0_11, %c0_12], %15 {strides = array<i32>} : memref<128x128xf32, #tpu.memory_space<vmem>>, vector<128x128xf32>,
    } else {
    }
    return
  }
  func.func @transform_0(%arg0: i32, %arg1: i32, %arg2: i32) -> (i32, i32) {
    %c0_i32 = arith.constant 0 : i32
    return %arg1, %arg2 : i32, i32
  }
  func.func @transform_1(%arg0: i32, %arg1: i32, %arg2: i32) -> (i32, i32) {
    %c0_i32 = arith.constant 0 : i32
    %c0_i32_0 = arith.constant 0 : i32
    return %c0_i32, %arg0 : i32, i32
  }
  func.func @transform_2(%arg0: i32, %arg1: i32, %arg2: i32) -> (i32, i32) {
    %c0_i32 = arith.constant 0 : i32
    %c0_i32_0 = arith.constant 0 : i32
    return %c0_i32, %arg0 : i32, i32
  }
  func.func @transform_3(%arg0: i32, %arg1: i32, %arg2: i32) -> (i32, i32) {
    %c0_i32 = arith.constant 0 : i32
    return %arg1, %arg0 : i32, i32
  }
}

</mosaic_0001>

<bundles_post_ra>
// kernel: downsample_forward.1
= control target key start
LH: loop header
LB: loop body
LE: loop exit
PB: predicated region body
PF: predicated region fallthrough
CT: control target
= control target key end

     0   :  { %s577_s1 = inlined_call_operand.vmem [shape: bf16[128,128], index: 1, kind: input, shape index: {}]   ;;  %s578_s0 = inlined_call_operand.vmem [shape: bf16[128,128], index: 0, kind: input, shape index: {}]   ;;  %s579_s2 = inlined_call_operand.vmem [shape: f32[1,128], index: 2, kind: input, shape index: {}]   ;;  %s580_s3 = inlined_call_operand.vmem [shape: f32[128,128], index: 3, kind: output, shape index: {}]  }
   0x1   :  { %v442_v0 = vld [vmem:[%s577_s1] sm:$0xff]   ;;  %v443_v1 = vld [vmem:[%s577_s1 + $0x8] sm:$0xff]   ;;  %v444_v2 = vld [vmem:[%s577_s1 + $0x10] sm:$0xff]  }
   0x2   :  { %394 = vmatprep.subr.bf16.mxu0 %v442_v0  ;;  %426 = vmatprep.subr.bf16.mxu1 %v442_v0  ;;  %v445_v3 = vld [vmem:[%s577_s1 + $0x18] sm:$0xff]   ;;  %v450_v4 = vld [vmem:[%s578_s0] sm:$0xff]   ;;  %v447_v7 = vld [vmem:[%s577_s1 + $0x28] sm:$0xff]  }
   0x3   :  { %395 = vmatpush3.bf16.msra.mxu0 %v442_v0  ;;  %434 = vmatpush3.bf16.msra.mxu1 %v442_v0  ;;  %v451_v5 = vld [vmem:[%s578_s0 + $0x20] sm:$0xff]   ;;  %v448_v8 = vld [vmem:[%s577_s1 + $0x30] sm:$0xff]   ;;  %v449_v9 = vld [vmem:[%s577_s1 + $0x38] sm:$0xff]  }
   0x4   :  { %396 = vmatprep.subr.bf16.mxu0 %v443_v1  ;;  %427 = vmatprep.subr.bf16.mxu1 %v443_v1  ;;  %v446_v6 = vld [vmem:[%s577_s1 + $0x20] sm:$0xff]   ;;  %v452_v10 = vld [vmem:[%s578_s0 + $0x8] sm:$0xff]   ;;  %v454_v12 = vld [vmem:[%s578_s0 + $0x10] sm:$0xff]  }
   0x5   :  { %410 = vmatprep.mubr.bf16.mxu0 %v450_v4  ;;  %418 = vmatprep.mubr.bf16.mxu1 %v451_v5  ;;  %v453_v11 = vld [vmem:[%s578_s0 + $0x28] sm:$0xff]   ;;  %v455_v13 = vld [vmem:[%s578_s0 + $0x30] sm:$0xff]   ;;  %v456_v14 = vld [vmem:[%s578_s0 + $0x18] sm:$0xff]  }
   0x6   :  { %v457_v15 = vld [vmem:[%s578_s0 + $0x38] sm:$0xff]   ;;  %v361_v16 = vld [vmem:[%s579_s2] ss:$0 sm:$0xff] }
   0x7   :  { %397 = vmatpush3.bf16.msra.mxu0 %v443_v1  ;;  %435 = vmatpush3.bf16.msra.mxu1 %v443_v1 }
   0x8   :  { %398 = vmatprep.subr.bf16.mxu0 %v444_v2  ;;  %428 = vmatprep.subr.bf16.mxu1 %v444_v2 }
   0xb   :  { %399 = vmatpush3.bf16.msra.mxu0 %v444_v2  ;;  %436 = vmatpush3.bf16.msra.mxu1 %v444_v2 }
   0xc   :  { %400 = vmatprep.subr.bf16.mxu0 %v445_v3  ;;  %429 = vmatprep.subr.bf16.mxu1 %v445_v3 }
   0xf   :  { %401 = vmatpush3.bf16.msra.mxu0 %v445_v3  ;;  %437 = vmatpush3.bf16.msra.mxu1 %v445_v3 }
  0x10   :  { %402 = vmatprep.subr.bf16.mxu0 %v446_v6  ;;  %430 = vmatprep.subr.bf16.mxu1 %v446_v6 }
  0x13   :  { %403 = vmatpush3.bf16.msra.mxu0 %v446_v6  ;;  %438 = vmatpush3.bf16.msra.mxu1 %v446_v6 }
  0x14   :  { %404 = vmatprep.subr.bf16.mxu0 %v447_v7  ;;  %431 = vmatprep.subr.bf16.mxu1 %v447_v7 }
  0x17   :  { %405 = vmatpush3.bf16.msra.mxu0 %v447_v7  ;;  %439 = vmatpush3.bf16.msra.mxu1 %v447_v7 }
  0x18   :  { %406 = vmatprep.subr.bf16.mxu0 %v448_v8  ;;  %432 = vmatprep.subr.bf16.mxu1 %v448_v8 }
  0x1b   :  { %407 = vmatpush3.bf16.msra.mxu0 %v448_v8  ;;  %440 = vmatpush3.bf16.msra.mxu1 %v448_v8 }
  0x1c   :  { %408 = vmatprep.subr.bf16.mxu0 %v449_v9  ;;  %433 = vmatprep.subr.bf16.mxu1 %v449_v9 }
  0x1f   :  { %409 = vmatpush3.bf16.msra.mxu0 %v449_v9  ;;  %441 = vmatpush3.bf16.msra.mxu1 %v449_v9 }
  0x22   :  { %411 = vmatmul.mubr.bf16.vlgmr.msra.gmra.mrb[0].mxu0 %v452_v10  ;;  %419 = vmatmul.mubr.bf16.vlgmr.msra.gmra.mrb[0].mxu1 %v453_v11 }
  0x23   :  { %414 = vmatprep.mubr.bf16.mxu0 %v454_v12  ;;  %422 = vmatprep.mubr.bf16.mxu1 %v455_v13 }
  0x2a   :  { %415 = vmatmul.mubr.bf16.gmra.mrb[4].mxu0 %v456_v14  ;;  %423 = vmatmul.mubr.bf16.gmra.mrb[4].mxu1 %v457_v15 }
  0xf5   :  { %v412_v17 = vpop.f32.mrb[0].mxu0  ;;  %v420_v18 = vpop.f32.mrb[0].mxu1 }
  0xf6   :  { %v290_v19 = vadd.f32 %v412_v17, %v361_v16  ;;  %v298_v20 = vadd.f32 %v420_v18, %v361_v16  ;;  %v225_v21 = vpop.f32.mrb[1].mxu0  ;;  %v257_v22 = vpop.f32.mrb[1].mxu1 }
  0xf7   :  { %v288_v23 = vadd.f32 %v361_v16, %v225_v21  ;;  %v296_v24 = vadd.f32 %v361_v16, %v257_v22  ;;  %v413_v25 = vpop.f32.mrb[2].mxu0  ;;  %v421_v26 = vpop.f32.mrb[2].mxu1 }
  0xf8   :  { %341 = vst [vmem:[%s580_s3 + $0x10] sm:$0xff] %v290_v19  ;;  %349 = vst [vmem:[%s580_s3 + $0x50] sm:$0xff] %v298_v20  ;;  %v291_v27 = vadd.f32 %v413_v25, %v361_v16  ;;  %v299_v28 = vadd.f32 %v421_v26, %v361_v16  ;;  %v228_v29 = vpop.f32.mrb[3].mxu0  ;;  %v260_v30 = vpop.f32.mrb[3].mxu1 }
  0xf9   :  { %339 = vst [vmem:[%s580_s3] sm:$0xff] %v288_v23  ;;  %347 = vst [vmem:[%s580_s3 + $0x40] sm:$0xff] %v296_v24  ;;  %v289_v31 = vadd.f32 %v361_v16, %v228_v29  ;;  %v297_v32 = vadd.f32 %v361_v16, %v260_v30 }
  0xfa   :  { %342 = vst [vmem:[%s580_s3 + $0x18] sm:$0xff] %v291_v27  ;;  %350 = vst [vmem:[%s580_s3 + $0x58] sm:$0xff] %v299_v28 }
  0xfb   :  { %340 = vst [vmem:[%s580_s3 + $0x8] sm:$0xff] %v289_v31  ;;  %348 = vst [vmem:[%s580_s3 + $0x48] sm:$0xff] %v297_v32 }
  0xfd   :  { %v416_v33 = vpop.f32.mrb[4].mxu0  ;;  %v424_v34 = vpop.f32.mrb[4].mxu1 }
  0xfe   :  { %v294_v35 = vadd.f32 %v416_v33, %v361_v16  ;;  %v302_v36 = vadd.f32 %v424_v34, %v361_v16  ;;  %v241_v37 = vpop.f32.mrb[5].mxu0  ;;  %v273_v38 = vpop.f32.mrb[5].mxu1 }
  0xff   :  { %v292_v39 = vadd.f32 %v361_v16, %v241_v37  ;;  %v300_v40 = vadd.f32 %v361_v16, %v273_v38  ;;  %v417_v41 = vpop.f32.mrb[6].mxu0  ;;  %v425_v42 = vpop.f32.mrb[6].mxu1 }
 0x100   :  { %345 = vst [vmem:[%s580_s3 + $0x30] sm:$0xff] %v294_v35  ;;  %353 = vst [vmem:[%s580_s3 + $0x70] sm:$0xff] %v302_v36  ;;  %v295_v43 = vadd.f32 %v417_v41, %v361_v16  ;;  %v303_v44 = vadd.f32 %v425_v42, %v361_v16  ;;  %v244_v45 = vpop.f32.mrb[7].mxu0  ;;  %v276_v46 = vpop.f32.mrb[7].mxu1 }
 0x101   :  { %343 = vst [vmem:[%s580_s3 + $0x20] sm:$0xff] %v292_v39  ;;  %351 = vst [vmem:[%s580_s3 + $0x60] sm:$0xff] %v300_v40  ;;  %v293_v47 = vadd.f32 %v361_v16, %v244_v45  ;;  %v301_v48 = vadd.f32 %v361_v16, %v276_v46 }
 0x102   :  { %346 = vst [vmem:[%s580_s3 + $0x38] sm:$0xff] %v295_v43  ;;  %354 = vst [vmem:[%s580_s3 + $0x78] sm:$0xff] %v303_v44 }
 0x103   :  { %344 = vst [vmem:[%s580_s3 + $0x28] sm:$0xff] %v293_v47  ;;  %352 = vst [vmem:[%s580_s3 + $0x68] sm:$0xff] %v301_v48 }

</bundles_post_ra>
